<compile_context>
chip_gen: v5e
topology: v5e:2x2
jax: 0.10.0
libtpu: 0.0.40
codegen_flags: <defaults>
</compile_context>

<pallas_src>
import functools

import jax
import jax.numpy as jnp
from jax.experimental import pallas as pl
from jax.experimental.pallas import tpu as pltpu

_LANES = 128


def _linear_kernel(x_ref, w_ref, b_ref, o_ref):
    # x_ref: (TB, 128)  w_ref: (128, 128)  b_ref: (1, 128)  o_ref: (TB, 128)
    acc = jnp.dot(x_ref[...], w_ref[...], preferred_element_type=jnp.float32)
    o_ref[...] = (acc + b_ref[...]).astype(o_ref.dtype)


@functools.partial(jax.jit, static_argnames=("tb",))
def pallas_linear(x, w_block, b_packed, *, tb=4096):
    """y = x @ W.T + b via a lane-packed Pallas TPU kernel.

    x:        (B, 32) float32
    w_block:  (128, 128) block-diagonal, 4 copies of W.T on the diagonal
    b_packed: (1, 128)   bias tiled 4x along lanes
    """
    B, f_in = x.shape
    pack = _LANES // f_in                       # 4 rows per 128-lane packed row
    f_out = b_packed.shape[1] // pack           # 32

    # Pack 4 rows into one 128-lane row.  Pad at most (pack-1) rows; the common
    # case B % pack == 0 performs no padding and no extra HBM copy.
    pad_rows = (-B) % pack
    if pad_rows:
        x = jnp.pad(x, ((0, pad_rows), (0, 0)))
    bp = x.shape[0] // pack
    xp = x.reshape(bp, pack * f_in)             # (Bp, 128), metadata-only

    # Batch tile (packed rows per grid step).  Either the full array (any size)
    # or a multiple of 8 sublanes; 4096 rows = 2 MiB per streamed buffer.
    tb_rows = min(tb, bp)
    if tb_rows < bp:
        tb_rows = max(8, (tb_rows // 8) * 8)
    grid = (pl.cdiv(bp, tb_rows),)

    itemsize = jnp.dtype(x.dtype).itemsize
    cost = pl.CostEstimate(
        flops=2 * bp * _LANES * _LANES,
        bytes_accessed=bp * _LANES * itemsize        # packed x stream in
        + bp * _LANES * itemsize                     # packed y stream out
        + _LANES * _LANES * 4 + _LANES * 4,          # resident weight + bias
        transcendentals=0,
    )

    out_packed = pl.pallas_call(
        _linear_kernel,
        out_shape=jax.ShapeDtypeStruct((bp, _LANES), x.dtype),
        grid=grid,
        in_specs=[
            pl.BlockSpec((tb_rows, _LANES), lambda i: (i, 0)),   # streamed
            pl.BlockSpec((_LANES, _LANES), lambda i: (0, 0)),    # VMEM-resident
            pl.BlockSpec((1, _LANES), lambda i: (0, 0)),         # VMEM-resident
        ],
        out_specs=pl.BlockSpec((tb_rows, _LANES), lambda i: (i, 0)),
        compiler_params=pltpu.CompilerParams(
            dimension_semantics=("parallel",),       # v7x: shard over 2 TCs
        ),
        cost_estimate=cost,
    )(xp, w_block, b_packed)

    out = out_packed.reshape(bp * pack, f_out)       # metadata-only
    if pad_rows:
        out = out[:B]
    return out


class Layer:
    """JAX/Pallas mirror of the PyTorch `Layer` module (Linear 32 -> 32)."""

    def __init__(self, key, in_features=32, out_features=32):
        kw, kb = jax.random.split(key)
        # Deterministic init (uniform like torch.nn.Linear's default range).
        bound = 1.0 / (in_features ** 0.5)
        self.weight = jax.random.uniform(
            kw, (out_features, in_features), jnp.float32, -bound, bound)
        self.bias = jax.random.uniform(
            kb, (out_features,), jnp.float32, -bound, bound)

        # Hoisted glue, done once (not per forward call):
        #   * W.T -> 128x128 block-diagonal (4 copies, zeros off-diagonal)
        #   * bias tiled 4x along lanes -> (1, 128)
        pack = _LANES // in_features                          # 4
        w_t = self.weight.T                                   # (F_in, F_out)
        self.w_block = jnp.kron(jnp.eye(pack, dtype=w_t.dtype), w_t)  # (128,128)
        self.b_packed = jnp.tile(self.bias, pack).reshape(1, _LANES)  # (1,128)
        self.count = 0

    def __call__(self, x):
        self.count += 1
        return pallas_linear(x, self.w_block, self.b_packed)


if __name__ == "__main__":
    key = jax.random.PRNGKey(0)
    k_param, k_x1, k_x2, k_x3 = jax.random.split(key, 4)

    layer = Layer(k_param)

    # Small input consistent with the module: batch=8, hidden=32.
    x = jax.random.normal(k_x1, (8, 32), jnp.float32)
    y = jax.block_until_ready(layer(x))
    y_ref = x @ layer.weight.T + layer.bias
    assert y.shape == (8, 32)
    assert jnp.allclose(y, y_ref, atol=1e-5, rtol=1e-5)

    # Batch not divisible by the 4-row lane packing (exercises the <=3-row pad).
    x2 = jax.random.normal(k_x2, (10, 32), jnp.float32)
    y2 = jax.block_until_ready(layer(x2))
    y2_ref = x2 @ layer.weight.T + layer.bias
    assert y2.shape == (10, 32)
    assert jnp.allclose(y2, y2_ref, atol=1e-5, rtol=1e-5)

    # Larger batch (520 rows -> 130 packed rows, partial-block masking path).
    x3 = jax.random.normal(k_x3, (520, 32), jnp.float32)
    y3 = jax.block_until_ready(layer(x3))
    y3_ref = x3 @ layer.weight.T + layer.bias
    assert y3.shape == (520, 32)
    assert jnp.allclose(y3, y3_ref, atol=1e-5, rtol=1e-5)

    assert layer.count == 3
    print("KERNEL_OK")
</pallas_src>

<mosaic_0001>
module attributes {stable_mosaic.version = 11 : i64} {
  func.func @_linear_kernel(%arg0: i32, %arg1: memref<2x128xf32, #tpu.memory_space<vmem>>, %arg2: memref<128x128xf32, #tpu.memory_space<vmem>>, %arg3: memref<1x128xf32, #tpu.memory_space<vmem>>, %arg4: memref<2x128xf32, #tpu.memory_space<vmem>>) attributes {dimension_semantics = [#tpu.dimension_semantics<parallel>], iteration_bounds = array<i64: 1>, scalar_prefetch = 0 : i64, scratch_operands = 0 : i64, tpu.core_type = #tpu.core_type<tc>, window_params = [{transform_indices = @transform_0, window_bounds = array<i64: 2, 128>}, {pipeline_mode = #tpu.pipeline_mode<synchronous>, transform_indices = @transform_1, window_bounds = array<i64: 128, 128>}, {pipeline_mode = #tpu.pipeline_mode<synchronous>, transform_indices = @transform_2, window_bounds = array<i64: 1, 128>}, {transform_indices = @transform_3, window_bounds = array<i64: 2, 128>}]} {
    %c0 = arith.constant 0 : index
    %c0_0 = arith.constant 0 : index
    %0 = vector.load %arg1[%c0, %c0_0] : memref<2x128xf32, #tpu.memory_space<vmem>>, vector<2x128xf32>
    %c0_1 = arith.constant 0 : index
    %c0_2 = arith.constant 0 : index
    %1 = vector.load %arg2[%c0_1, %c0_2] : memref<128x128xf32, #tpu.memory_space<vmem>>, vector<128x128xf32>
    %cst = arith.constant dense<0.000000e+00> : vector<2x128xf32>
    %2 = tpu.matmul %0, %1, %cst {dimension_numbers = #tpu.dot_dimension_numbers<[1], [0], [0], [1], [0, 0, 1, 1], [], []>} : vector<2x128xf32>, vector<128x128xf32>, vector<2x128xf32> -> vector<2x128xf32>
    %c0_3 = arith.constant 0 : index
    %c0_4 = arith.constant 0 : index
    %3 = vector.load %arg3[%c0_3, %c0_4] : memref<1x128xf32, #tpu.memory_space<vmem>>, vector<1x128xf32>
    %4 = vector.broadcast %3 : vector<1x128xf32> to vector<2x128xf32>
    %5 = arith.addf %2, %4 : vector<2x128xf32>
    %c0_5 = arith.constant 0 : index
    %c0_6 = arith.constant 0 : index
    %6 = vector.load %arg4[%c0_5, %c0_6] : memref<2x128xf32, #tpu.memory_space<vmem>>, vector<2x128xf32>
    tpu.vector_store %arg4[%c0_5, %c0_6], %5 {strides = array<i32>} : memref<2x128xf32, #tpu.memory_space<vmem>>, vector<2x128xf32>,
    return
  }
  func.func @transform_0(%arg0: i32) -> (i32, i32) {
    %c0_i32 = arith.constant 0 : i32
    %c0_i32_0 = arith.constant 0 : i32
    return %arg0, %c0_i32 : i32, i32
  }
  func.func @transform_1(%arg0: i32) -> (i32, i32) {
    %c0_i32 = arith.constant 0 : i32
    %c0_i32_0 = arith.constant 0 : i32
    %c0_i32_1 = arith.constant 0 : i32
    return %c0_i32, %c0_i32_0 : i32, i32
  }
  func.func @transform_2(%arg0: i32) -> (i32, i32) {
    %c0_i32 = arith.constant 0 : i32
    %c0_i32_0 = arith.constant 0 : i32
    %c0_i32_1 = arith.constant 0 : i32
    return %c0_i32, %c0_i32_0 : i32, i32
  }
  func.func @transform_3(%arg0: i32) -> (i32, i32) {
    %c0_i32 = arith.constant 0 : i32
    %c0_i32_0 = arith.constant 0 : i32
    return %arg0, %c0_i32 : i32, i32
  }
}

</mosaic_0001>

<bundles_post_ra>
// kernel: pallas_linear.1
= control target key start
LH: loop header
LB: loop body
LE: loop exit
PB: predicated region body
PF: predicated region fallthrough
CT: control target
= control target key end

     0   :  { %8 = vsyncpa [#allocation3], 0  ;;  %s107_s15 = smov [#allocation2]   ;;  %s108_s17 = smov 128   ;;  %s142_s0 = inlined_call_operand.vmem [shape: f32[2,128], index: 0, kind: input, shape index: {}]   ;;  %s143_s1 = inlined_call_operand.hbm [shape: f32[128,128], index: 1, kind: input, shape index: {}]   ;;  %s144_s2 = inlined_call_operand.vmem [shape: f32[1,128], index: 2, kind: input, shape index: {}]   ;;  %s145_s3 = inlined_call_operand.vmem [shape: f32[2,128], index: 3, kind: output, shape index: {}]  }
   0x1   :  { %s15_s14 = sshll.u32 %s143_s1, 4  ;;  %s17_s16 = sshll.u32 %s107_s15, 4  ;;  %s16_s14 = int_to_ptr.hbm [resolvable:$true] %s15_s14  ;;  %s18_s16 = int_to_ptr.vmem [resolvable:$true] %s17_s16 }
   0x2   :  { %s109_s18 = smov 8  }
   0x3   :  { %23 = dma.hbm_to_vmem [thread:$0]  %s16_s14, 2048, %s18_s16, [#allocation3], %s108_s17, %s108_s17, %s109_s18  }
   0x4   :  { %105 = dma.done.wait [#allocation3], 2048  }
   0x5   :  { %106 = vsyncadd [#allocation3], 4294965248  ;;  %v46_v0 = vld [vmem:[#allocation2 + $0x78] sm:$0xff]  ;;  %v45_v1 = vld [vmem:[#allocation2 + $0x70] sm:$0xff] }
   0x6   :  { %51 = vmatpush.msra.mxu0 %v46_v0  ;;  %v44_v2 = vld [vmem:[#allocation2 + $0x68] sm:$0xff]  ;;  %v43_v3 = vld [vmem:[#allocation2 + $0x60] sm:$0xff]  ;;  %v42_v4 = vld [vmem:[#allocation2 + $0x58] sm:$0xff] }
   0x7   :  { %v41_v5 = vld [vmem:[#allocation2 + $0x50] sm:$0xff]  ;;  %v40_v6 = vld [vmem:[#allocation2 + $0x48] sm:$0xff]  ;;  %v39_v7 = vld [vmem:[#allocation2 + $0x40] sm:$0xff] }
   0x8   :  { %52 = vmatpush.msra.mxu0 %v45_v1  ;;  %v38_v8 = vld [vmem:[#allocation2 + $0x38] sm:$0xff]  ;;  %v37_v9 = vld [vmem:[#allocation2 + $0x30] sm:$0xff]  ;;  %v36_v10 = vld [vmem:[#allocation2 + $0x28] sm:$0xff] }
   0x9   :  { %v35_v11 = vld [vmem:[#allocation2 + $0x20] sm:$0xff]  ;;  %v34_v12 = vld [vmem:[#allocation2 + $0x18] sm:$0xff]  ;;  %v33_v13 = vld [vmem:[#allocation2 + $0x10] sm:$0xff] }
   0xa   :  { %53 = vmatpush.msra.mxu0 %v44_v2  ;;  %v32_v14 = vld [vmem:[#allocation2 + $0x8] sm:$0xff]  ;;  %v31_v15 = vld [vmem:[#allocation2] sm:$0xff] }
   0xb   :  { %v30_v16 = vld [vmem:[%s142_s0] sm:$0x3] }
   0xc   :  { %54 = vmatpush.msra.mxu0 %v43_v3  ;;  %v80_v17 = vld [vmem:[%s144_s2] ss:$0 sm:$0xff] }
   0xe   :  { %55 = vmatpush.msra.mxu0 %v42_v4 }
  0x10   :  { %56 = vmatpush.msra.mxu0 %v41_v5 }
  0x12   :  { %57 = vmatpush.msra.mxu0 %v40_v6 }
  0x14   :  { %58 = vmatpush.msra.mxu0 %v39_v7 }
  0x16   :  { %59 = vmatpush.msra.mxu0 %v38_v8 }
  0x18   :  { %60 = vmatpush.msra.mxu0 %v37_v9 }
  0x1a   :  { %61 = vmatpush.msra.mxu0 %v36_v10 }
  0x1c   :  { %62 = vmatpush.msra.mxu0 %v35_v11 }
  0x1e   :  { %63 = vmatpush.msra.mxu0 %v34_v12 }
  0x20   :  { %64 = vmatpush.msra.mxu0 %v33_v13 }
  0x22   :  { %65 = vmatpush.msra.mxu0 %v32_v14 }
  0x24   :  { %66 = vmatpush.msra.mxu0 %v31_v15 }
  0x25   :  { %67 = vmatmul.f32.vlgmr.msra.gmra.mxu0 %v30_v16 }
  0xa2   :  { %v68_v18 = vpop.f32.mrf.mxu0 }
  0xa3   :  { %v69_v19 = vadd.f32 %v80_v17, %v68_v18 }
  0xa5   :  { %71 = vst [vmem:[%s145_s3] sm:$0x3] %v69_v19 }
  0xa6   :  { %76 = vsyncpa [#allocation3], 1 }

</bundles_post_ra>
